<compile_context>
chip_gen: v7x
topology: tpu7x:2x2x1
jax: 0.10.0
libtpu: 0.0.40
codegen_flags: <defaults>
</compile_context>

<pallas_src>
import functools
import math

import jax
import jax.numpy as jnp
from jax import lax
from jax.experimental import pallas as pl
from jax.experimental.pallas import tpu as pltpu

N_EMBD = 642  # matches the module's global n_embd


# --------------------------------------------------------------------------------------
# helpers
# --------------------------------------------------------------------------------------
def _round_up(x, m):
    return (x + m - 1) // m * m


def _padded_bytes(shape, dtype):
    """VMEM footprint of one block including lane (128) / sublane padding."""
    itemsize = jnp.dtype(dtype).itemsize
    dims = list(shape)
    if dims:
        dims[-1] = _round_up(dims[-1], 128)                       # lane dim
    if len(dims) >= 2:
        dims[-2] = _round_up(dims[-2], 8 * max(1, 4 // itemsize))  # sublane dim (8 f32 / 16 bf16)
    n = 1
    for d in dims:
        n *= d
    return n * itemsize


def _vmem_limit(buffers):
    """Scoped VMEM budget: double-buffered padded blocks + headroom, clamped below physical."""
    need = 2 * sum(_padded_bytes(s, d) for s, d in buffers) + (4 << 20)
    try:
        cap = pltpu.get_tpu_info().vmem_capacity_bytes
    except Exception:
        cap = 64 << 20  # conservative default = v7x per-TC physical VMEM
    return int(min(max(need, 16 << 20), (cap * 3) // 4))


# --------------------------------------------------------------------------------------
# kernel 1: fused QKV projection, tiled over (B, T)
# --------------------------------------------------------------------------------------
def qkv_proj_kernel(x_ref, w_ref, q_ref, k_ref, v_ref, *, scale):
    # x_ref : (1, tq, C) f32     w_ref : (C, 3H) f32  (fused [Wq | Wk | Wv])
    # q_ref/k_ref/v_ref : (1, tq, H) bf16   (q pre-scaled by 1/sqrt(H))
    H = q_ref.shape[-1]
    qkv = jnp.dot(x_ref[0], w_ref[...], preferred_element_type=jnp.float32)  # (tq, 3H)
    q_ref[0] = (qkv[:, :H] * scale).astype(q_ref.dtype)
    k_ref[0] = qkv[:, H:2 * H].astype(k_ref.dtype)
    v_ref[0] = qkv[:, 2 * H:].astype(v_ref.dtype)


# --------------------------------------------------------------------------------------
# kernel 2: causal flash attention, grid (B, q_tiles), kv loop in-kernel (triangular)
# --------------------------------------------------------------------------------------
def attn_kernel(q_ref, k_ref, v_ref, o_ref, *, tq, tk):
    # q_ref : (1, tq, H) bf16 (pre-scaled)   k_ref/v_ref : (1, Tp, H) bf16
    # o_ref : (1, tq, H) f32
    qi = pl.program_id(1)
    H = q_ref.shape[-1]
    q = q_ref[0]  # (tq, H) bf16

    def score(start):
        k = k_ref[0, pl.ds(start, tk), :]                               # (tk, H) bf16
        return lax.dot_general(q, k, (((1,), (1,)), ((), ())),
                               preferred_element_type=jnp.float32)       # (tq, tk) f32

    def update(start, s, carry):
        m_prev, l_prev, acc_prev = carry
        m_new = jnp.maximum(m_prev, jnp.max(s, axis=-1, keepdims=True))
        alpha = jnp.exp(m_prev - m_new)
        p = jnp.exp(s - m_new)                                           # f32 exp on EUP
        l_new = alpha * l_prev + jnp.sum(p, axis=-1, keepdims=True)
        v = v_ref[0, pl.ds(start, tk), :]                                # (tk, H) bf16
        acc_new = alpha * acc_prev + jnp.dot(p.astype(v.dtype), v,
                                             preferred_element_type=jnp.float32)
        return m_new, l_new, acc_new

    carry0 = (jnp.full((tq, 1), -jnp.inf, jnp.float32),
              jnp.zeros((tq, 1), jnp.float32),
              jnp.zeros((tq, H), jnp.float32))

    # Strictly-below-diagonal kv tiles: no mask work at all; state is loop-carried.
    def body(kv, carry):
        start = pl.multiple_of(kv * tk, tk)
        return update(start, score(start), carry)

    m, l, acc = lax.fori_loop(0, qi, body, carry0)

    # Diagonal tile: local causal mask (tq == tk, qi == kj), finalize, store.
    d_start = pl.multiple_of(qi * tk, tk)
    s = score(d_start)
    row = lax.broadcasted_iota(jnp.int32, (tq, tk), 0)
    col = lax.broadcasted_iota(jnp.int32, (tq, tk), 1)
    s = jnp.where(col <= row, s, -jnp.inf)  # every row keeps its diagonal -> m stays finite
    m, l, acc = update(d_start, s, (m, l, acc))

    o_ref[0] = (acc * pl.reciprocal(l, approx=True)).astype(o_ref.dtype)


# --------------------------------------------------------------------------------------
# wrapper
# --------------------------------------------------------------------------------------
def head_forward(x, w_qkv, head_size, *, block_q=None):
    """x: (B, T, C) f32; w_qkv: (C, 3*head_size) = [Wq|Wk|Wv]  ->  (B, T, head_size)."""
    B, T, C = x.shape
    H = head_size
    assert w_qkv.shape == (C, 3 * H)

    # Tile size: multiple of 16 (bf16 sublane packing), default 128.
    tq = block_q if block_q is not None else 128
    tq = max(16, _round_up(tq, 16))
    tq = min(tq, _round_up(T, 16))
    Tp = _round_up(T, tq)
    tk = tq
    nq = Tp // tq

    if Tp != T:
        # Zero-pad the sequence: causal masking means real queries never attend padded
        # keys (they sit at higher positions); padded query rows are sliced off below.
        x = jnp.pad(x, ((0, 0), (0, Tp - T), (0, 0)))

    scale = 1.0 / math.sqrt(H)  # SDPA default scale = 1/sqrt(E)

    # ---- pass 1: fused QKV projection (one MXU matmul per (b, T-tile)) ----
    proj_vmem = _vmem_limit([((1, tq, C), jnp.float32),
                             ((C, 3 * H), jnp.float32),
                             ((1, tq, H), jnp.bfloat16),
                             ((1, tq, H), jnp.bfloat16),
                             ((1, tq, H), jnp.bfloat16)])
    q, k, v = pl.pallas_call(
        functools.partial(qkv_proj_kernel, scale=scale),
        out_shape=(
            jax.ShapeDtypeStruct((B, Tp, H), jnp.bfloat16),  # q (pre-scaled)
            jax.ShapeDtypeStruct((B, Tp, H), jnp.bfloat16),  # k
            jax.ShapeDtypeStruct((B, Tp, H), jnp.bfloat16),  # v
        ),
        grid_spec=pltpu.PrefetchScalarGridSpec(
            num_scalar_prefetch=0,
            grid=(B, nq),
            in_specs=[
                pl.BlockSpec((1, tq, C), lambda b, t: (b, t, 0)),
                pl.BlockSpec((C, 3 * H), lambda b, t: (0, 0)),
            ],
            out_specs=(
                pl.BlockSpec((1, tq, H), lambda b, t: (b, t, 0)),
                pl.BlockSpec((1, tq, H), lambda b, t: (b, t, 0)),
                pl.BlockSpec((1, tq, H), lambda b, t: (b, t, 0)),
            ),
        ),
        compiler_params=pltpu.CompilerParams(
            dimension_semantics=("parallel", "parallel"),
            vmem_limit_bytes=proj_vmem,
        ),
    )(x, w_qkv)

    # ---- pass 2: triangular flash attention ----
    attn_vmem = _vmem_limit([((1, tq, H), jnp.bfloat16),
                             ((1, Tp, H), jnp.bfloat16),
                             ((1, Tp, H), jnp.bfloat16),
                             ((1, tq, H), jnp.float32)])
    out = pl.pallas_call(
        functools.partial(attn_kernel, tq=tq, tk=tk),
        out_shape=jax.ShapeDtypeStruct((B, Tp, H), x.dtype),
        grid_spec=pltpu.PrefetchScalarGridSpec(
            num_scalar_prefetch=0,
            grid=(B, nq),
            in_specs=[
                pl.BlockSpec((1, tq, H), lambda b, qi: (b, qi, 0)),
                pl.BlockSpec((1, Tp, H), lambda b, qi: (b, 0, 0)),
                pl.BlockSpec((1, Tp, H), lambda b, qi: (b, 0, 0)),
            ],
            out_specs=pl.BlockSpec((1, tq, H), lambda b, qi: (b, qi, 0)),
        ),
        compiler_params=pltpu.CompilerParams(
            dimension_semantics=("parallel", "parallel"),
            vmem_limit_bytes=attn_vmem,
        ),
    )(q, k, v)

    return out[:, :T, :]


# --------------------------------------------------------------------------------------
# pure-JAX reference (matches torch SDPA(is_causal=True, dropout=0))
# --------------------------------------------------------------------------------------
def head_reference(x, wq, wk, wv):
    q = x @ wq
    k = x @ wk
    v = x @ wv
    T = x.shape[1]
    H = q.shape[-1]
    s = jnp.einsum("btd,bsd->bts", q, k) / math.sqrt(H)
    mask = jnp.tril(jnp.ones((T, T), dtype=bool))
    s = jnp.where(mask[None], s, -jnp.inf)
    p = jax.nn.softmax(s, axis=-1)
    return jnp.einsum("bts,bsd->btd", p, v)


if __name__ == "__main__":
    C, H = N_EMBD, 32  # head_size = 32

    key = jax.random.PRNGKey(0)
    kx1, kx2, kx3, kq, kk, kv = jax.random.split(key, 6)

    # Deterministic weight init (stand-in for nn.Linear's uniform init), stored as
    # (in_features, out_features) = (C, H), then fused to (C, 3H) = [Wq | Wk | Wv].
    bound = 1.0 / math.sqrt(C)
    wq = jax.random.uniform(kq, (C, H), jnp.float32, -bound, bound)
    wk = jax.random.uniform(kk, (C, H), jnp.float32, -bound, bound)
    wv = jax.random.uniform(kv, (C, H), jnp.float32, -bound, bound)
    w_qkv = jnp.concatenate([wq, wk, wv], axis=1)  # (C, 3H)

    # bf16 MXU operands inside the kernel -> compare at bf16-level tolerance.
    RTOL, ATOL = 2e-2, 1e-2

    # Case 1: toy shape matching the module scale (B=2, T=8); single (padded) tile.
    x1 = jax.random.normal(kx1, (2, 8, C), dtype=jnp.float32)
    out1 = jax.block_until_ready(head_forward(x1, w_qkv, H))
    ref1 = head_reference(x1, wq, wk, wv)
    assert out1.shape == (2, 8, H)
    assert jnp.allclose(out1, ref1, rtol=RTOL, atol=ATOL), "mismatch vs reference (T=8)"

    # Case 2: multi-tile triangular path (B=2, T=32, 16x16 tiles) to exercise the kv loop.
    x2 = jax.random.normal(kx2, (2, 32, C), dtype=jnp.float32)
    out2 = jax.block_until_ready(head_forward(x2, w_qkv, H, block_q=16))
    ref2 = head_reference(x2, wq, wk, wv)
    assert out2.shape == (2, 32, H)
    assert jnp.allclose(out2, ref2, rtol=RTOL, atol=ATOL), "mismatch vs reference (T=32)"

    # Case 3: non-divisible T (B=2, T=40) to exercise the zero-pad + slice path.
    x3 = jax.random.normal(kx3, (2, 40, C), dtype=jnp.float32)
    out3 = jax.block_until_ready(head_forward(x3, w_qkv, H, block_q=16))
    ref3 = head_reference(x3, wq, wk, wv)
    assert out3.shape == (2, 40, H)
    assert jnp.allclose(out3, ref3, rtol=RTOL, atol=ATOL), "mismatch vs reference (T=40)"

    print("KERNEL_OK")
</pallas_src>

<mosaic_0001>
module attributes {stable_mosaic.version = 11 : i64} {
  func.func @qkv_proj_kernel(%arg0: i32, %arg1: i32, %arg2: memref<1x16x642xf32, #tpu.memory_space<vmem>>, %arg3: memref<642x96xf32, #tpu.memory_space<vmem>>, %arg4: memref<1x16x32xbf16, #tpu.memory_space<vmem>>, %arg5: memref<1x16x32xbf16, #tpu.memory_space<vmem>>, %arg6: memref<1x16x32xbf16, #tpu.memory_space<vmem>>) attributes {dimension_semantics = [#tpu.dimension_semantics<parallel>, #tpu.dimension_semantics<parallel>], iteration_bounds = array<i64: 2, 1>, scalar_prefetch = 0 : i64, scratch_operands = 0 : i64, tpu.core_type = #tpu.core_type<tc>, window_params = [{transform_indices = @transform_0, window_bounds = array<i64: 1, 16, 642>}, {pipeline_mode = #tpu.pipeline_mode<synchronous>, transform_indices = @transform_1, window_bounds = array<i64: 642, 96>}, {transform_indices = @transform_2, window_bounds = array<i64: 1, 16, 32>}, {transform_indices = @transform_3, window_bounds = array<i64: 1, 16, 32>}, {transform_indices = @transform_4, window_bounds = array<i64: 1, 16, 32>}]} {
    %c0 = arith.constant 0 : index
    %c0_0 = arith.constant 0 : index
    %c0_1 = arith.constant 0 : index
    %0 = vector.load %arg2[%c0, %c0_0, %c0_1] : memref<1x16x642xf32, #tpu.memory_space<vmem>>, vector<1x16x642xf32>
    %1 = vector.shape_cast %0 : vector<1x16x642xf32> to vector<16x642xf32>
    %c0_2 = arith.constant 0 : index
    %c0_3 = arith.constant 0 : index
    %2 = vector.load %arg3[%c0_2, %c0_3] : memref<642x96xf32, #tpu.memory_space<vmem>>, vector<642x96xf32>
    %cst = arith.constant dense<0.000000e+00> : vector<16x96xf32>
    %3 = tpu.matmul %1, %2, %cst {dimension_numbers = #tpu.dot_dimension_numbers<[1], [0], [0], [1], [0, 0, 1, 1], [], []>} : vector<16x642xf32>, vector<642x96xf32>, vector<16x96xf32> -> vector<16x96xf32>
    %4 = vector.extract_strided_slice %3 {offsets = [0, 0], sizes = [16, 32], strides = [1, 1]} : vector<16x96xf32> to vector<16x32xf32>
    %cst_4 = arith.constant 0.176776692 : f32
    %5 = vector.broadcast %cst_4 : f32 to vector<16x32xf32>
    %6 = arith.mulf %4, %5 : vector<16x32xf32>
    %7 = arith.truncf %6 : vector<16x32xf32> to vector<16x32xbf16>
    %c0_5 = arith.constant 0 : index
    %c0_6 = arith.constant 0 : index
    %c0_7 = arith.constant 0 : index
    %8 = vector.load %arg4[%c0_5, %c0_6, %c0_7] : memref<1x16x32xbf16, #tpu.memory_space<vmem>>, vector<1x16x32xbf16>
    %9 = vector.shape_cast %8 : vector<1x16x32xbf16> to vector<16x32xbf16>
    %10 = vector.shape_cast %7 : vector<16x32xbf16> to vector<1x16x32xbf16>
    tpu.vector_store %arg4[%c0_5, %c0_6, %c0_7], %10 {strides = array<i32>} : memref<1x16x32xbf16, #tpu.memory_space<vmem>>, vector<1x16x32xbf16>,
    %11 = vector.extract_strided_slice %3 {offsets = [0, 32], sizes = [16, 32], strides = [1, 1]} : vector<16x96xf32> to vector<16x32xf32>
    %12 = arith.truncf %11 : vector<16x32xf32> to vector<16x32xbf16>
    %c0_8 = arith.constant 0 : index
    %c0_9 = arith.constant 0 : index
    %c0_10 = arith.constant 0 : index
    %13 = vector.load %arg5[%c0_8, %c0_9, %c0_10] : memref<1x16x32xbf16, #tpu.memory_space<vmem>>, vector<1x16x32xbf16>
    %14 = vector.shape_cast %13 : vector<1x16x32xbf16> to vector<16x32xbf16>
    %15 = vector.shape_cast %12 : vector<16x32xbf16> to vector<1x16x32xbf16>
    tpu.vector_store %arg5[%c0_8, %c0_9, %c0_10], %15 {strides = array<i32>} : memref<1x16x32xbf16, #tpu.memory_space<vmem>>, vector<1x16x32xbf16>,
    %16 = vector.extract_strided_slice %3 {offsets = [0, 64], sizes = [16, 32], strides = [1, 1]} : vector<16x96xf32> to vector<16x32xf32>
    %17 = arith.truncf %16 : vector<16x32xf32> to vector<16x32xbf16>
    %c0_11 = arith.constant 0 : index
    %c0_12 = arith.constant 0 : index
    %c0_13 = arith.constant 0 : index
    %18 = vector.load %arg6[%c0_11, %c0_12, %c0_13] : memref<1x16x32xbf16, #tpu.memory_space<vmem>>, vector<1x16x32xbf16>
    %19 = vector.shape_cast %18 : vector<1x16x32xbf16> to vector<16x32xbf16>
    %20 = vector.shape_cast %17 : vector<16x32xbf16> to vector<1x16x32xbf16>
    tpu.vector_store %arg6[%c0_11, %c0_12, %c0_13], %20 {strides = array<i32>} : memref<1x16x32xbf16, #tpu.memory_space<vmem>>, vector<1x16x32xbf16>,
    return
  }
  func.func @transform_0(%arg0: i32, %arg1: i32) -> (i32, i32, i32) {
    %c0_i32 = arith.constant 0 : i32
    %c0_i32_0 = arith.constant 0 : i32
    return %arg0, %arg1, %c0_i32 : i32, i32, i32
  }
  func.func @transform_1(%arg0: i32, %arg1: i32) -> (i32, i32) {
    %c0_i32 = arith.constant 0 : i32
    %c0_i32_0 = arith.constant 0 : i32
    %c0_i32_1 = arith.constant 0 : i32
    return %c0_i32, %c0_i32_0 : i32, i32
  }
  func.func @transform_2(%arg0: i32, %arg1: i32) -> (i32, i32, i32) {
    %c0_i32 = arith.constant 0 : i32
    %c0_i32_0 = arith.constant 0 : i32
    return %arg0, %arg1, %c0_i32 : i32, i32, i32
  }
  func.func @transform_3(%arg0: i32, %arg1: i32) -> (i32, i32, i32) {
    %c0_i32 = arith.constant 0 : i32
    %c0_i32_0 = arith.constant 0 : i32
    return %arg0, %arg1, %c0_i32 : i32, i32, i32
  }
  func.func @transform_4(%arg0: i32, %arg1: i32) -> (i32, i32, i32) {
    %c0_i32 = arith.constant 0 : i32
    %c0_i32_0 = arith.constant 0 : i32
    return %arg0, %arg1, %c0_i32 : i32, i32, i32
  }
}

</mosaic_0001>

<bundles_post_ra>
// kernel: tpu_custom_call.1
= control target key start
LH: loop header
LB: loop body
LE: loop exit
PB: predicated region body
PF: predicated region fallthrough
CT: control target
= control target key end

     0   :  { %10 = vsyncpa [#allocation3], 0  ;;  %s1780_s0 = inlined_call_operand.vmem [shape: f32[2,16,642], index: 0, kind: input, shape index: {}]   ;;  %s1781_s1 = inlined_call_operand.vmem [shape: f32[642,96], index: 1, kind: input, shape index: {}]   ;;  %s1782_s2 = inlined_call_operand.hbm [shape: bf16[2,16,32], index: 2, kind: output, shape index: {0}]   ;;  %s1783_s3 = inlined_call_operand.hbm [shape: bf16[2,16,32], index: 3, kind: output, shape index: {1}]   ;;  %s1784_s4 = inlined_call_operand.hbm [shape: bf16[2,16,32], index: 4, kind: output, shape index: {2}]  }
   0x1   :  { %12 = vsyncpa [#allocation3 + $0x1], 0 }
   0x2   :  { %13 = vsyncpa [#allocation5], 0 }
   0x3   :  { %15 = vsyncpa [#allocation5 + $0x1], 0  ;;  %s1289_s15 = smov 0   ;;  %s1291_s16 = smov 0  }
   0x4   :  { %s1293_s17 = smov 0   ;;  %s1295_s18 = smov 0  }
   0x5   :  { %s1297_s19 = smov 0   ;;  %s1299_s20 = smov 0  }
   0x6 LB: > { %s829_s21 = sadd.s32 4294967295, %s1254_s20   ;;  %s1785_s22 = sadd.s32 4294967294, %s1254_s20   ;;  %s1254_s20 = sphi %s1299_s20, %s21_s20   ;;  %s1250_s19 = sphi %s1297_s19, %s1793_s19   ;;  %s1246_s18 = sphi %s1295_s18, %s1792_s18   ;;  %s1242_s17 = sphi %s1293_s17, %s1791_s17   ;;  %s1238_s16 = sphi %s1291_s16, %s1790_s16   ;;  %s1234_s15 = sphi %s1289_s15, %s1789_s15  }
   0x7   : > { %s33_s23 = sadd.s32 1, %s1250_s19  ;;  %s91_s24 = sadd.s32 1, %s1242_s17 }
   0x8   : > { %p35_p0 = scmp.ge.s32.totalorder %s33_s23, 2  ;;  %p101_p1 = scmp.ne.s32.totalorder %s1242_s17, %s1238_s16 }
   0x9   : > { %p102_p2 = scmp.eq.s32.totalorder %s829_s21, 1  ;;  %p107_p3 = scmp.ne.s32.totalorder %s1238_s16, %s1234_s15 }
   0xa   : > { %s1795_s23 = smov (%p35_p0, %s33_s23), 0  ;;  %p108_p5 = scmp.eq.s32.totalorder %s1785_s22, 1 }
   0xb   : > { %p1331_p4 = por %p102_p2, %p101_p1  ;;  %s86_s26 = ssub.s32 %s1250_s19, %s1795_s23 }
   0xc   : > { %p833_p6 = scmp.ge.s32.totalorder %s1254_s20, 1  ;;  %p89_p7 = scmp.eq.s32.totalorder %s86_s26, 0 }
   0xd   : > { %p1340_p8 = por %p108_p5, %p107_p3  ;;  %p199_p9 = scmp.lt.s32.totalorder %s1254_s20, 3 }
   0xe   : > { %s1346_s28 = scalar_select %p89_p7, %s1242_s17, %s91_s24  }
   0xf   : > { %p200_p10 = pnand %p833_p6, %p199_p9 }
  0x10   : > { %v282_v0 = vld [vmem:[%s1781_s1 + $0x80] sm:$0xff] (!%p200_p10)  ;;  %v283_v1 = vld [vmem:[%s1781_s1 + $0x88] sm:$0xff] (!%p200_p10)  ;;  %v284_v11 = vld [vmem:[%s1781_s1 + $0x90] sm:$0xff] (!%p200_p10)  ;;  %p241_p11 = scmp.lt.s32.totalorder (!%p200_p10), %s1246_s18, 1  ;;  %vm347_vm0 = vcmask (!%p200_p10), 15360   ;;  %vm354_vm1 = vcmask (!%p200_p10), 1041408  }
  0x11   : > { %203 = sbr.rel (%p200_p10) target bundleno = 457 (0x1c9), region = 28  ;;  %v314_v2 = vld [vmem:[%s1781_s1 + $0x180] sm:$0xff] (!%p200_p10)  ;;  %v939_v3 = vpack.c.bf16 (!%p200_p10), %v283_v1, %v282_v0  ;;  %v315_v4 = vld [vmem:[%s1781_s1 + $0x188] sm:$0xff] (!%p200_p10)  ;;  %v285_v13 = vld [vmem:[%s1781_s1 + $0x98] sm:$0xff] (!%p200_p10)  ;;  %vm593_vm2 = vcmask (!%p200_p10), 257024   ;;  %s1636_s12 = sshll.u32 (!%p200_p10), %s1246_s18, 7 }
  0x12   : > { %v266_v5 = vld [vmem:[%s1781_s1] sm:$0xff] (!%p200_p10)  ;;  %v267_v6 = vld [vmem:[%s1781_s1 + $0x8] sm:$0xff] (!%p200_p10)  ;;  %v971_v7 = vpack.c.bf16 (!%p200_p10), %v315_v4, %v314_v2  ;;  %v316_v14 = vld [vmem:[%s1781_s1 + $0x190] sm:$0xff] (!%p200_p10)  ;;  %v943_v16 = vpack.c.bf16 (!%p200_p10), %v285_v13, %v284_v11  ;;  %s1259_s14 = smov (!%p200_p10), 96   ;;  %s1646_s26 = scalar_lea.hbm (!%p200_p10), %s1782_s2, %s1636_s12 }
  0x13   : > { %v941_v8 = vpack.c.bf16 (!%p200_p10), %v267_v6, %v266_v5  ;;  %v298_v9 = vld [vmem:[%s1781_s1 + $0x100] sm:$0xff] (!%p200_p10)  ;;  %v299_v10 = vld [vmem:[%s1781_s1 + $0x108] sm:$0xff] (!%p200_p10)  ;;  %940 = vmatprep.subr.bf16.mxu0 (!%p200_p10), %v939_v3  ;;  %v317_v15 = vld [vmem:[%s1781_s1 + $0x198] sm:$0xff] (!%p200_p10)  ;;  %s1260_s6 = smov (!%p200_p10), [#allocation2]  }
  0x14   : > { %v973_v12 = vpack.c.bf16 (!%p200_p10), %v299_v10, %v298_v9  ;;  %972 = vmatprep.subr.bf16.mxu1 (!%p200_p10), %v971_v7  ;;  %v975_v17 = vpack.c.bf16 (!%p200_p10), %v317_v15, %v316_v14  ;;  %v268_v18 = vld [vmem:[%s1781_s1 + $0x10] sm:$0xff] (!%p200_p10)  ;;  %v269_v19 = vld [vmem:[%s1781_s1 + $0x18] sm:$0xff] (!%p200_p10)  ;;  %v286_v23 = vld [vmem:[%s1781_s1 + $0xa0] sm:$0xff] (!%p200_p10) }
  0x15   : > { %942 = vmatpush3.bf16.msra.mxu0 (!%p200_p10), %v941_v8  ;;  %v300_v20 = vld [vmem:[%s1781_s1 + $0x110] sm:$0xff] (!%p200_p10)  ;;  %v945_v21 = vpack.c.bf16 (!%p200_p10), %v269_v19, %v268_v18  ;;  %v301_v22 = vld [vmem:[%s1781_s1 + $0x118] sm:$0xff] (!%p200_p10)  ;;  %v287_v24 = vld [vmem:[%s1781_s1 + $0xa8] sm:$0xff] (!%p200_p10) }
  0x16   : > { %974 = vmatpush3.bf16.msra.mxu1 (!%p200_p10), %v973_v12  ;;  %944 = vmatprep.subr.bf16.mxu0 (!%p200_p10), %v943_v16  ;;  %v977_v25 = vpack.c.bf16 (!%p200_p10), %v301_v22, %v300_v20  ;;  %v947_v26 = vpack.c.bf16 (!%p200_p10), %v287_v24, %v286_v23  ;;  %v318_v27 = vld [vmem:[%s1781_s1 + $0x1a0] sm:$0xff] (!%p200_p10)  ;;  %v319_v28 = vld [vmem:[%s1781_s1 + $0x1a8] sm:$0xff] (!%p200_p10)  ;;  %v288_v35 = vld [vmem:[%s1781_s1 + $0xb0] sm:$0xff] (!%p200_p10) }
  0x17   : > { %976 = vmatprep.subr.bf16.mxu1 (!%p200_p10), %v975_v17  ;;  %v270_v29 = vld [vmem:[%s1781_s1 + $0x20] sm:$0xff] (!%p200_p10)  ;;  %v979_v30 = vpack.c.bf16 (!%p200_p10), %v319_v28, %v318_v27  ;;  %v271_v31 = vld [vmem:[%s1781_s1 + $0x28] sm:$0xff] (!%p200_p10)  ;;  %v289_v36 = vld [vmem:[%s1781_s1 + $0xb8] sm:$0xff] (!%p200_p10) }
  0x18   : > { %v302_v32 = vld [vmem:[%s1781_s1 + $0x120] sm:$0xff]  ;;  %v303_v33 = vld [vmem:[%s1781_s1 + $0x128] sm:$0xff]  ;;  %v949_v34 = vpack.c.bf16 %v271_v31, %v270_v29  ;;  %v320_v37 = vld [vmem:[%s1781_s1 + $0x1b0] sm:$0xff]  ;;  %v951_v39 = vpack.c.bf16 %v289_v36, %v288_v35  ;;  %s1451_s13 = scalar_select %p241_p11, %s1246_s18, 1 }
  0x19   : > { %946 = vmatpush3.bf16.msra.mxu0 %v945_v21  ;;  %v981_v38 = vpack.c.bf16 %v303_v33, %v302_v32  ;;  %v321_v40 = vld [vmem:[%s1781_s1 + $0x1b8] sm:$0xff]  ;;  %v272_v41 = vld [vmem:[%s1781_s1 + $0x30] sm:$0xff]  ;;  %v290_v46 = vld [vmem:[%s1781_s1 + $0xc0] sm:$0xff] }
  0x1a   : > { %978 = vmatpush3.bf16.msra.mxu1 %v977_v25  ;;  %948 = vmatprep.subr.bf16.mxu0 %v947_v26  ;;  %v273_v42 = vld [vmem:[%s1781_s1 + $0x38] sm:$0xff]  ;;  %v983_v43 = vpack.c.bf16 %v321_v40, %v320_v37  ;;  %v304_v44 = vld [vmem:[%s1781_s1 + $0x130] sm:$0xff]  ;;  %v291_v47 = vld [vmem:[%s1781_s1 + $0xc8] sm:$0xff]  ;;  %s1045_s5 = smul.u32 96, %s1451_s13  ;;  %s1258_s13 = smov 64  }
  0x1b   : > { %980 = vmatprep.subr.bf16.mxu1 %v979_v30  ;;  %v305_v45 = vld [vmem:[%s1781_s1 + $0x138] sm:$0xff]  ;;  %v322_v48 = vld [vmem:[%s1781_s1 + $0x1c0] sm:$0xff]  ;;  %v323_v49 = vld [vmem:[%s1781_s1 + $0x1c8] sm:$0xff]  ;;  %v953_v50 = vpack.c.bf16 %v273_v42, %v272_v41  ;;  %v955_v52 = vpack.c.bf16 %v291_v47, %v290_v46 }
  0x1c   : > { %v985_v51 = vpack.c.bf16 %v305_v45, %v304_v44  ;;  %v274_v53 = vld [vmem:[%s1781_s1 + $0x40] sm:$0xff]  ;;  %v275_v54 = vld [vmem:[%s1781_s1 + $0x48] sm:$0xff]  ;;  %v987_v56 = vpack.c.bf16 %v323_v49, %v322_v48  ;;  %v292_v58 = vld [vmem:[%s1781_s1 + $0xd0] sm:$0xff]  ;;  %s1508_s11 = scalar_lea.vmem %s1780_s0, %s1045_s5  ;;  %s1120_s5 = sshll.u32 %s1260_s6, 4  ;;  %s1121_s5 = int_to_ptr.vmem [resolvable:$false] %s1120_s5 }
  0x1d   : > { %950 = vmatpush3.bf16.msra.mxu0 %v949_v34  ;;  %v306_v55 = vld [vmem:[%s1781_s1 + $0x140] sm:$0xff]  ;;  %v307_v57 = vld [vmem:[%s1781_s1 + $0x148] sm:$0xff]  ;;  %v293_v59 = vld [vmem:[%s1781_s1 + $0xd8] sm:$0xff]  ;;  %v957_v62 = vpack.c.bf16 %v275_v54, %v274_v53  ;;  %s1122_s7 = scalar_lea.vmem %s1121_s5, 256 }
  0x1e   : > { %982 = vmatpush3.bf16.msra.mxu1 %v981_v38  ;;  %952 = vmatprep.subr.bf16.mxu0 %v951_v39  ;;  %v324_v60 = vld [vmem:[%s1781_s1 + $0x1d0] sm:$0xff]  ;;  %v325_v61 = vld [vmem:[%s1781_s1 + $0x1d8] sm:$0xff]  ;;  %v989_v63 = vpack.c.bf16 %v307_v57, %v306_v55  ;;  %v959_v0 = vpack.c.bf16 %v293_v59, %v292_v58  ;;  %v294_v6 = vld [vmem:[%s1781_s1 + $0xe0] sm:$0xff]  ;;  %v1256_v39 = vmov 0.0|0.0  }
  0x1f   : > { %984 = vmatprep.subr.bf16.mxu1 %v983_v43  ;;  %v276_v1 = vld [vmem:[%s1781_s1 + $0x50] sm:$0xff]  ;;  %v277_v2 = vld [vmem:[%s1781_s1 + $0x58] sm:$0xff]  ;;  %v991_v4 = vpack.c.bf16 %v325_v61, %v324_v60  ;;  %v295_v7 = vld [vmem:[%s1781_s1 + $0xe8] sm:$0xff] }
  0x20   : > { %v308_v3 = vld [vmem:[%s1781_s1 + $0x150] sm:$0xff]  ;;  %v309_v5 = vld [vmem:[%s1781_s1 + $0x158] sm:$0xff]  ;;  %v326_v8 = vld [vmem:[%s1781_s1 + $0x1e0] sm:$0xff]  ;;  %v961_v10 = vpack.c.bf16 %v277_v2, %v276_v1  ;;  %v963_v14 = vpack.c.bf16 %v295_v7, %v294_v6 }
  0x21   : > { %954 = vmatpush3.bf16.msra.mxu0 %v953_v50  ;;  %v327_v9 = vld [vmem:[%s1781_s1 + $0x1e8] sm:$0xff]  ;;  %v278_v11 = vld [vmem:[%s1781_s1 + $0x60] sm:$0xff]  ;;  %v993_v13 = vpack.c.bf16 %v309_v5, %v308_v3  ;;  %v257_v17 = vld [vmem:[%s1508_s11 + $0x18] sm:$0xff]  ;;  %v1257_v3 = vmov 0.0  }
  0x22   : > { %986 = vmatpush3.bf16.msra.mxu1 %v985_v51  ;;  %956 = vmatprep.subr.bf16.mxu0 %v955_v52  ;;  %v279_v12 = vld [vmem:[%s1781_s1 + $0x68] sm:$0xff]  ;;  %v310_v15 = vld [vmem:[%s1781_s1 + $0x160] sm:$0xff]  ;;  %v995_v18 = vpack.c.bf16 %v327_v9, %v326_v8  ;;  %v296_v20 = vld [vmem:[%s1781_s1 + $0xf0] sm:$0xff] }
  0x23   : > { %988 = vmatprep.subr.bf16.mxu1 %v987_v56  ;;  %v255_v16 = vld [vmem:[%s1508_s11 + $0x8] sm:$0xff]  ;;  %v297_v21 = vld [vmem:[%s1781_s1 + $0xf8] sm:$0xff]  ;;  %v328_v22 = vld [vmem:[%s1781_s1 + $0x1f0] sm:$0xff]  ;;  %497 = vmatprep.mubr.f32.mxu1 %v257_v17  ;;  %v965_v24 = vpack.c.bf16 %v279_v12, %v278_v11 }
  0x24   : > { %v311_v19 = vld [vmem:[%s1781_s1 + $0x168] sm:$0xff]  ;;  %422 = vmatprep.mubr.f32.mxu0 %v255_v16  ;;  %v329_v23 = vld [vmem:[%s1781_s1 + $0x1f8] sm:$0xff]  ;;  %v967_v26 = vpack.c.bf16 %v297_v21, %v296_v20  ;;  %v280_v27 = vld [vmem:[%s1781_s1 + $0x70] sm:$0xff] }
  0x25   : > { %958 = vmatpush3.bf16.msra.mxu0 %v957_v62  ;;  %v997_v25 = vpack.c.bf16 %v311_v19, %v310_v15  ;;  %v281_v28 = vld [vmem:[%s1781_s1 + $0x78] sm:$0xff]  ;;  %v999_v29 = vpack.c.bf16 %v329_v23, %v328_v22  ;;  %v312_v30 = vld [vmem:[%s1781_s1 + $0x170] sm:$0xff]  ;;  %v330_v34 = vld [vmem:[%s1781_s1 + $0x200] sm:$0xff] }
  0x26   : > { %990 = vmatpush3.bf16.msra.mxu1 %v989_v63  ;;  %960 = vmatprep.subr.bf16.mxu0 %v959_v0  ;;  %v313_v31 = vld [vmem:[%s1781_s1 + $0x178] sm:$0xff]  ;;  %v969_v32 = vpack.c.bf16 %v281_v28, %v280_v27  ;;  %v331_v35 = vld [vmem:[%s1781_s1 + $0x208] sm:$0xff]  ;;  %v254_v36 = vld [vmem:[%s1508_s11] sm:$0xff] }
  0x27   : > { %992 = vmatprep.subr.bf16.mxu1 %v991_v4  ;;  %v1001_v33 = vpack.c.bf16 %v313_v31, %v312_v30  ;;  %v1004_v37 = vpack.c.bf16 %v331_v35, %v330_v34  ;;  %v256_v38 = vld [vmem:[%s1508_s11 + $0x10] sm:$0xff]  ;;  %v333_v41 = vld [vmem:[%s1781_s1 + $0x218] sm:$0xff]  ;;  %v263_v44 = vld [vmem:[%s1508_s11 + $0x48] sm:$0xff] }
  0x28   : > { %v332_v40 = vld [vmem:[%s1781_s1 + $0x210] sm:$0xff]  ;;  %v261_v42 = vld [vmem:[%s1508_s11 + $0x38] sm:$0xff]  ;;  %v334_v46 = vld [vmem:[%s1781_s1 + $0x220] sm:$0xff] }
  0x29   : > { %962 = vmatpush3.bf16.msra.mxu0 %v961_v10  ;;  %v1007_v43 = vpack.c.bf16 %v333_v41, %v332_v40  ;;  %v260_v45 = vld [vmem:[%s1508_s11 + $0x30] sm:$0xff]  ;;  %v335_v47 = vld [vmem:[%s1781_s1 + $0x228] sm:$0xff]  ;;  %v262_v48 = vld [vmem:[%s1508_s11 + $0x40] sm:$0xff] }
  0x2a   : > { %994 = vmatpush3.bf16.msra.mxu1 %v993_v13  ;;  %964 = vmatprep.subr.bf16.mxu0 %v963_v14  ;;  %v259_v49 = vld [vmem:[%s1508_s11 + $0x28] sm:$0xff]  ;;  %v1010_v50 = vpack.c.bf16 %v335_v47, %v334_v46  ;;  %v265_v51 = vld [vmem:[%s1508_s11 + $0x58] sm:$0xff]  ;;  %v336_v52 = vld [vmem:[%s1781_s1 + $0x230] sm:$0xff] }
  0x2b   : > { %996 = vmatprep.subr.bf16.mxu1 %v995_v18  ;;  %v337_v53 = vld [vmem:[%s1781_s1 + $0x238] sm:$0xff]  ;;  %v338_v55 = vld [vmem:[%s1781_s1 + $0x240] sm:$0xff]  ;;  %v339_v56 = vld [vmem:[%s1781_s1 + $0x248] sm:$0xff] }
  0x2c   : > { %v1013_v54 = vpack.c.bf16 %v337_v53, %v336_v52  ;;  %v1016_v57 = vpack.c.bf16 %v339_v56, %v338_v55  ;;  %v340_v58 = vld [vmem:[%s1781_s1 + $0x250] sm:$0xff]  ;;  %v341_v59 = vld [vmem:[%s1781_s1 + $0x258] sm:$0xff]  ;;  %v342_v61 = vld [vmem:[%s1781_s1 + $0x260] sm:$0xff] }
  0x2d   : > { %966 = vmatpush3.bf16.msra.mxu0 %v965_v24  ;;  %v1019_v60 = vpack.c.bf16 %v341_v59, %v340_v58  ;;  %v343_v62 = vld [vmem:[%s1781_s1 + $0x268] sm:$0xff]  ;;  %v344_v0 = vld [vmem:[%s1781_s1 + $0x270] sm:$0xff]  ;;  %v345_v1 = vld [vmem:[%s1781_s1 + $0x278] sm:$0xff] }
  0x2e   : > { %998 = vmatpush3.bf16.msra.mxu1 %v997_v25  ;;  %968 = vmatprep.subr.bf16.mxu0 %v967_v26  ;;  %v1022_v63 = vpack.c.bf16 %v343_v62, %v342_v61  ;;  %v1025_v2 = vpack.c.bf16 %v345_v1, %v344_v0  ;;  %v346_v4 = vld [vmem:[%s1781_s1 + $0x280] sm:$0x3]  ;;  %v264_v6 = vld [vmem:[%s1508_s11 + $0x50] sm:$0xff] }
  0x2f   : > { %1000 = vmatprep.subr.bf16.mxu1 %v999_v29  ;;  %v258_v5 = vld [vmem:[%s1508_s11 + $0x20] sm:$0xff]  ;;  %s223_s11 = sand.u32 1, %s1238_s16  }
  0x30   : > { %s1632_s8 = sshll.u32 %s223_s11, 3  ;;  %s1650_s29 = scalar_lea.sflag [#allocation3], %s223_s11 }
  0x31   : > { %970 = vmatpush3.bf16.msra.mxu0 %v969_v32  ;;  %s225_s9 = scalar_lea.vmem [#allocation2], %s1632_s8 }
  0x32   : > { %1002 = vmatpush3.bf16.msra.mxu1 %v1001_v33  ;;  %1003 = vmatprep.subr.bf16.mxu0 %v1256_v39  ;;  %s644_s10 = sshll.u32 %s225_s9, 4  ;;  %s1639_s10 = int_to_ptr.vmem [resolvable:$true] %s644_s10 }
  0x33   : > { %1027 = vmatprep.subr.bf16.mxu1 %v1256_v39  ;;  %s1116_s30 = scalar_lea.vmem %s1639_s10, 128  ;;  %p1123_p1 = scmp.lt.s32.totalorder %s1639_s10, %s1121_s5 }
  0x34   : > { %423 = vmatmul.mubr.f32.vlgmr.msra.gmra.mrb[0].mxu0 %v254_v36  ;;  %p1117_p12 = scmp.ne.s32.totalorder %s1639_s10, %s1116_s30  ;;  %p1124_p2 = scmp.lt.s32.totalorder %s1122_s7, %s1116_s30 }
  0x35   : > { %498 = vmatmul.mubr.f32.vlgmr.msra.gmra.mrb[0].mxu1 %v256_v38  ;;  %1005 = vmatpush1.bf16.msra.mxu0 %v1004_v37 }
  0x36   : > { %1036 = vmatpush1.bf16.msra.mxu1 %v1004_v37  ;;  %1006 = vmatprep.subr.bf16.mxu0 %v1256_v39  ;;  %p1118_p13 = pnand %p1117_p12, %p1331_p4  ;;  %p1125_p3 = por %p1124_p2, %p1123_p1 }
  0x37   : > { %1028 = vmatprep.subr.bf16.mxu1 %v1256_v39  ;;  %427 = vmatprep.mubr.f32.mxu0 %v261_v42 }
  0x38   : > { %502 = vmatprep.mubr.f32.mxu1 %v263_v44  ;;  %428 = vmatmul.mubr.f32.gmra.mrb[2].mxu0 %v260_v45  ;;  %p1119_p0 = pneg %p1118_p13 }
  0x39   : > { %1008 = vmatpush1.bf16.msra.mxu0 %v1007_v43  ;;  %503 = vmatmul.mubr.f32.gmra.mrb[2].mxu1 %v262_v48 }
  0x3a   : > { %1037 = vmatpush1.bf16.msra.mxu1 %v1007_v43  ;;  %1009 = vmatprep.subr.bf16.mxu0 %v1256_v39  ;;  %p1126_p5 = pnand %p1125_p3, %p1119_p0 }
  0x3b   : > { %1029 = vmatprep.subr.bf16.mxu1 %v1256_v39  ;;  %839 = vmatprep.mubr.msk.f32.mxu0 %vm347_vm0, %v259_v49 }
  0x3c   : > { %840 = vmatprep.mubr.msk.f32.mxu1 %vm347_vm0, %v265_v51 }
  0x3d   : > { %1011 = vmatpush1.bf16.msra.mxu0 %v1010_v50 }
  0x3e   : > { %1038 = vmatpush1.bf16.msra.mxu1 %v1010_v50  ;;  %1012 = vmatprep.subr.bf16.mxu0 %v1256_v39 }
  0x3f   : > { %1030 = vmatprep.subr.bf16.mxu1 %v1256_v39 }
  0x41   : > { %1014 = vmatpush1.bf16.msra.mxu0 %v1013_v54 }
  0x42   : > { %1039 = vmatpush1.bf16.msra.mxu1 %v1013_v54  ;;  %1015 = vmatprep.subr.bf16.mxu0 %v1256_v39 }
  0x43   : > { %1031 = vmatprep.subr.bf16.mxu1 %v1256_v39 }
  0x45   : > { %1017 = vmatpush1.bf16.msra.mxu0 %v1016_v57 }
  0x46   : > { %1040 = vmatpush1.bf16.msra.mxu1 %v1016_v57  ;;  %1018 = vmatprep.subr.bf16.mxu0 %v1256_v39 }
  0x47   : > { %1032 = vmatprep.subr.bf16.mxu1 %v1256_v39 }
  0x49   : > { %1020 = vmatpush1.bf16.msra.mxu0 %v1019_v60 }
  0x4a   : > { %1041 = vmatpush1.bf16.msra.mxu1 %v1019_v60  ;;  %1021 = vmatprep.subr.bf16.mxu0 %v1256_v39 }
  0x4b   : > { %1033 = vmatprep.subr.bf16.mxu1 %v1256_v39 }
  0x4d   : > { %1023 = vmatpush1.bf16.msra.mxu0 %v1022_v63 }
  0x4e   : > { %1042 = vmatpush1.bf16.msra.mxu1 %v1022_v63  ;;  %1024 = vmatprep.subr.bf16.mxu0 %v1256_v39 }
  0x4f   : > { %1034 = vmatprep.subr.bf16.mxu1 %v1256_v39 }
  0x51   : > { %1026 = vmatpush1.bf16.msra.mxu0 %v1025_v2 }
  0x52   : > { %1043 = vmatpush1.bf16.msra.mxu1 %v1025_v2  ;;  %540 = vmatprep.subr.mxu0 %v1257_v3 }
  0x53   : > { %1035 = vmatprep.subr.mxu1 %v1257_v3 }
  0x55   : > { %838 = vmatpush1.msk.msra.mxu0 %vm354_vm1, %v346_v4 }
  0x56   : > { %1044 = vmatpush1.msk.msra.mxu1 %vm354_vm1, %v346_v4  ;;  %573 = vmatmul.mubr.f32.vlgmr.msra.gmra.mrb[4].mxu0 %v258_v5 }
  0x57   : > { %578 = vmatmul.mubr.f32.vlgmr.msra.gmra.mrb[4].mxu1 %v264_v6 }
 0x107   : > { %v895_v7 = vpop.f32.mrb[0].mxu0 }
 0x108   : > { %v933_v8 = vpop.f32.mrb[0].mxu1  ;;  %v896_v9 = vpop.f32.mrb[1].mxu0 }
 0x109   : > { %v897_v10 = vadd.f32 %v896_v9, %v895_v7  ;;  %v934_v11 = vpop.f32.mrb[1].mxu1 }
 0x10a   : > { %v935_v12 = vadd.f32 %v934_v11, %v933_v8 }
 0x10b   : > { %v898_v13 = vpop.f32.mrb[2].mxu0 }
 0x10c   : > { %v936_v14 = vpop.f32.mrb[2].mxu1  ;;  %v899_v15 = vpop.f32.mrb[3].mxu0  ;;  %v500_v16 = vadd.f32 %v935_v12, %v897_v10 }
 0x10d   : > { %v900_v17 = vadd.f32 %v899_v15, %v898_v13  ;;  %v937_v18 = vpop.f32.mrb[3].mxu1 }
 0x10e   : > { %v938_v19 = vadd.f32 %v937_v18, %v936_v14 }
 0x110   : > { %v505_v20 = vadd.f32 %v938_v19, %v900_v17 }
 0x129   : > { %v574_v21 = vpop.f32.mrb[4].mxu0 }
 0x12a   : > { %v575_v22 = vadd.f32 %v574_v21, %v500_v16  ;;  %v579_v23 = vpop.f32.mrb[4].mxu1  ;;  %v576_v24 = vpop.f32.mrb[5].mxu0 }
 0x12b   : > { %v580_v25 = vadd.f32 %v579_v23, %v505_v20  ;;  %v581_v26 = vpop.f32.mrb[5].mxu1 }
 0x12c   : > { %v583_v27 = vmul.f32 0.17677669, %v575_v22  ;;  %v858_v28 = vpack.c.bf16 %v575_v22, %v575_v22 }
 0x12d   : > { %v584_v29 = vmul.f32 0.17677669, %v580_v25  ;;  %v859_v32 = vpack.c.bf16 %v580_v25, %v580_v25 }
 0x12e   : > { %v856_v30 = vpack.c.bf16 %v583_v27, %v583_v27  ;;  %610 = vrot.lane.b32.xlu1 %v858_v28, %s1258_s13  ;;  %602 = vrot.lane.b32.xlu0 %v858_v28, %s1259_s14 }
 0x12f   : > { %v857_v31 = vpack.c.bf16 %v584_v29, %v584_v29 }
 0x130   : > { %594 = vst.msk [vmem:[%s225_s9] sm:$0xf] %vm593_vm2, %v856_v30 }
 0x131   : > { %595 = vst.msk [vmem:[%s225_s9 + $0x4] sm:$0xf] %vm593_vm2, %v857_v31 }
 0x132   : > { %612 = vrot.lane.b32.xlu1 %v859_v32, %s1258_s13  ;;  %604 = vrot.lane.b32.xlu0 %v859_v32, %s1259_s14 }
 0x133   : > { %1129 = shalt.err (!%p1126_p5)
}
 0x134   : > { %s1130_s11 = scalar_lea.hbm %s1646_s26, 128  ;;  %s1134_s24 = scalar_lea.hbm %s1782_s2, 256 }
 0x135   : > { %p1131_p6 = scmp.ne.s32.totalorder %s1646_s26, %s1130_s11  ;;  %p1135_p10 = scmp.lt.u32.totalorder %s1646_s26, %s1782_s2 }
 0x136   : > { %p1136_p11 = scmp.lt.u32.totalorder %s1134_s24, %s1130_s11  ;;  %p1138_p13 = scmp.lt.u32.totalorder %s1130_s11, %s1646_s26 }
 0x137   : > { %p1132_p7 = pnand %p1131_p6, %p1331_p4 }
 0x138   : > { %p1137_p12 = por %p1136_p11, %p1135_p10 }
 0x139   : > { %p1133_p9 = pneg %p1132_p7 }
 0x13a   : > { %p1139_p0 = por %p1138_p13, %p1137_p12 }
 0x13c   : > { %p1140_p1 = pnand %p1139_p0, %p1133_p9 }
 0x13e   : > { %1143 = shalt.err (!%p1140_p1)
}
 0x13f   : > { %s1261_s30 = smov 4   ;;  %s232_s5 = scalar_lea.vmem [#allocation4], %s1632_s8 }
 0x140   : > { %1046 = dma.vmem_to_hbm [thread:$0]  (%p1331_p4), %s1639_s10, 128, %s1646_s26, %s1650_s29, %s1258_s13, %s1258_s13, %s1261_s30  }
 0x141   : > { %s662_s7 = sshll.u32 %s232_s5, 4  ;;  %s1680_s11 = sand.u32 1, %s829_s21   ;;  %s1685_s7 = int_to_ptr.vmem [resolvable:$true] %s662_s7 }
 0x142   : > { %s239_s9 = scalar_lea.vmem [#allocation6], %s1632_s8  ;;  %s1691_s10 = scalar_lea.hbm %s1783_s3, %s1636_s12 }
 0x143   : > { %s680_s14 = sshll.u32 %s239_s9, 4  ;;  %s1699_s26 = scalar_lea.hbm %s1784_s4, %s1636_s12  ;;  %s1693_s14 = int_to_ptr.vmem [resolvable:$true] %s680_s14 }
 0x144   : > { %s624_s29 = scalar_lea.sflag [#allocation5], %s1680_s11  ;;  %s1144_s6 = scalar_lea.vmem %s1685_s7, 128 }
 0x145   : > { %p1145_p2 = scmp.ne.s32.totalorder %s1685_s7, %s1144_s6  ;;  %s1262_s24 = smov [#allocation4]  }
 0x146   : > { %s1148_s18 = sshll.u32 %s1262_s24, 4  ;;  %s1149_s18 = int_to_ptr.vmem [resolvable:$false] %s1148_s18 }
 0x147   : > { %p1146_p3 = pnand %p1145_p2, %p1331_p4  ;;  %s1150_s22 = scalar_lea.vmem %s1149_s18, 256 }
 0x148   : > { %p1151_p6 = scmp.lt.s32.totalorder %s1685_s7, %s1149_s18  ;;  %p1152_p7 = scmp.lt.s32.totalorder %s1150_s22, %s1144_s6 }
 0x149   : > { %p1147_p5 = pneg %p1146_p3 }
 0x14a   : > { %p1153_p9 = por %p1152_p7, %p1151_p6 }
 0x14c   : > { %p1154_p10 = pnand %p1153_p9, %p1147_p5 }
 0x1a0   : > { %v611_v33 = vpop.permute.xlu1 %610  ;;  %v603_v34 = vpop.permute.xlu0 %602 }
 0x1a1   : > { %616 = vst.msk [vmem:[%s239_s9] sm:$0xf] %vm593_vm2, %v611_v33  ;;  %608 = vst.msk [vmem:[%s232_s5] sm:$0xf] %vm593_vm2, %v603_v34 }
 0x1a4   : > { %v613_v35 = vpop.permute.xlu1 %612  ;;  %v605_v36 = vpop.permute.xlu0 %604 }
 0x1a5   : > { %617 = vst.msk [vmem:[%s239_s9 + $0x4] sm:$0xf] %vm593_vm2, %v613_v35  ;;  %609 = vst.msk [vmem:[%s232_s5 + $0x4] sm:$0xf] %vm593_vm2, %v605_v36 }
 0x1a6   : > { %1157 = shalt.err (!%p1154_p10)
}
 0x1a7   : > { %s1158_s12 = scalar_lea.hbm %s1691_s10, 128  ;;  %s1162_s21 = scalar_lea.hbm %s1783_s3, 256 }
 0x1a8   : > { %p1159_p11 = scmp.ne.s32.totalorder %s1691_s10, %s1158_s12  ;;  %p1163_p0 = scmp.lt.u32.totalorder %s1691_s10, %s1783_s3 }
 0x1a9   : > { %p1164_p1 = scmp.lt.u32.totalorder %s1162_s21, %s1158_s12  ;;  %p1166_p3 = scmp.lt.u32.totalorder %s1158_s12, %s1691_s10 }
 0x1aa   : > { %p1160_p12 = pnand %p1159_p11, %p1331_p4 }
 0x1ab   : > { %p1165_p2 = por %p1164_p1, %p1163_p0 }
 0x1ac   : > { %p1161_p13 = pneg %p1160_p12 }
 0x1ad   : > { %p1167_p5 = por %p1166_p3, %p1165_p2 }
 0x1af   : > { %p1168_p6 = pnand %p1167_p5, %p1161_p13 }
 0x1b1   : > { %1171 = shalt.err (!%p1168_p6)
}
 0x1b2   : > { %1047 = dma.vmem_to_hbm [thread:$0]  (%p1331_p4), %s1685_s7, 128, %s1691_s10, %s624_s29, %s1258_s13, %s1258_s13, %s1261_s30  }
 0x1b3   : > { %s1172_s22 = scalar_lea.vmem %s1693_s14, 128  ;;  %s1263_s6 = smov [#allocation6]  }
 0x1b4   : > { %p1173_p7 = scmp.ne.s32.totalorder %s1693_s14, %s1172_s22  ;;  %s1176_s18 = sshll.u32 %s1263_s6, 4  ;;  %s1177_s18 = int_to_ptr.vmem [resolvable:$false] %s1176_s18 }
 0x1b5   : > { %s1178_s12 = scalar_lea.vmem %s1177_s18, 256  ;;  %p1179_p11 = scmp.lt.s32.totalorder %s1693_s14, %s1177_s18 }
 0x1b6   : > { %p1174_p9 = pnand %p1173_p7, %p1331_p4  ;;  %p1180_p12 = scmp.lt.s32.totalorder %s1178_s12, %s1172_s22 }
 0x1b8   : > { %p1175_p10 = pneg %p1174_p9  ;;  %p1181_p13 = por %p1180_p12, %p1179_p11 }
 0x1ba   : > { %p1182_p0 = pnand %p1181_p13, %p1175_p10 }
 0x1bc   : > { %1185 = shalt.err (!%p1182_p0)
}
 0x1bd   : > { %s1186_s7 = scalar_lea.hbm %s1699_s26, 128  ;;  %s1190_s9 = scalar_lea.hbm %s1784_s4, 256 }
 0x1be   : > { %p1187_p1 = scmp.ne.s32.totalorder %s1699_s26, %s1186_s7  ;;  %p1191_p5 = scmp.lt.u32.totalorder %s1699_s26, %s1784_s4 }
 0x1bf   : > { %p1192_p6 = scmp.lt.u32.totalorder %s1190_s9, %s1186_s7  ;;  %p1194_p9 = scmp.lt.u32.totalorder %s1186_s7, %s1699_s26 }
 0x1c0   : > { %p1188_p2 = pnand %p1187_p1, %p1331_p4 }
 0x1c1   : > { %p1193_p7 = por %p1192_p6, %p1191_p5 }
 0x1c2   : > { %p1189_p3 = pneg %p1188_p2 }
 0x1c3   : > { %p1195_p10 = por %p1194_p9, %p1193_p7 }
 0x1c5   : > { %p1196_p11 = pnand %p1195_p10, %p1189_p3 }
 0x1c7   : > { %1199 = shalt.err (!%p1196_p11)
}
 0x1c8   : > { %1048 = dma.vmem_to_hbm [thread:$0]  (%p1331_p4), %s1693_s14, 128, %s1699_s26, %s624_s29, %s1258_s13, %s1258_s13, %s1261_s30  }
 0x1c9 PF: > { %p1062_p12 = scmp.ge.s32.totalorder %s1254_s20, 2  ;;  %s695_s24 = sand.u32 1, %s1234_s15  }
 0x1ca   : > { %s696_s22 = scalar_lea.sflag [#allocation3], %s695_s24 }
 0x1cb   : > { %p1053_p13 = pnand %p1062_p12, %p1340_p8 }
 0x1cd   : > { %1225 = dma.done.wait (!%p1053_p13), %s696_s22, 128  }
 0x1ce   : > { %1227 = vsyncadd (!%p1053_p13), %s696_s22, 4294967168  ;;  %s1788_s25 = sadd.s32 4294967294, %s1254_s20  }
 0x1cf   : > { %s704_s6 = sand.u32 1, %s1788_s25  }
 0x1d0   : > { %s705_s18 = scalar_lea.sflag [#allocation5], %s704_s6 }
 0x1d1   : > { %1229 = dma.done.wait (!%p1053_p13), %s705_s18, 256  }
 0x1d2   : > { %1231 = vsyncadd (!%p1053_p13), %s705_s18, 4294967040  ;;  %s21_s20 = sadd.s32 1, %s1254_s20   ;;  %s1789_s15 = smov %s1238_s16 }
 0x1d3   : > { %p18_p4 = scmp.ge.s32.totalorder %s21_s20, 4   ;;  %s1790_s16 = smov %s1242_s17 }
 0x1d4   : > { %s1791_s17 = smov %s1346_s28  ;;  %s1792_s18 = smov %s1250_s19 }
 0x1d5   : > { %s1793_s19 = smov %s1795_s23  ;;  %20 = sbr.rel (!%p18_p4) target bundleno = 6 (0x6), region = 95 }
 0x1dc   :  { %719 = vsyncpa [#allocation3], 1 }
 0x1dd   :  { %721 = vsyncpa [#allocation3 + $0x1], 1 }
 0x1de   :  { %722 = vsyncpa [#allocation5], 1 }
 0x1df   :  { %724 = vsyncpa [#allocation5 + $0x1], 1 }

</bundles_post_ra>
